<compile_context>
chip_gen: v6e
topology: v6e:2x2x1
jax: 0.10.0
libtpu: 0.0.40
codegen_flags: <defaults>
</compile_context>

<pallas_src>
import jax
import jax.numpy as jnp
from jax.experimental import pallas as pl
from jax.experimental.pallas import tpu as pltpu

_LANE = 128
_SUB = 8


def _round_up(x, m):
    return ((x + m - 1) // m) * m


def _vmem_capacity_bytes():
    try:
        return int(pltpu.get_tpu_info().vmem_capacity_bytes)
    except Exception:
        return 64 << 20  # conservative fallback (v7x per-TensorCore VMEM)


def _largest_row_divisor(rows, cap, min_rows=64):
    """Largest multiple-of-8 divisor of `rows` that is <= cap (or None)."""
    cand = (min(cap, rows) // _SUB) * _SUB
    while cand >= min_rows:
        if rows % cand == 0:
            return cand
        cand -= _SUB
    return None


def _make_dice_kernel(has_weights, reduce_to_sublanes, br):
    def kernel(*refs):
        if has_weights:
            p_ref, g_ref, m_ref, w_ref, oi_ref, op_ref, og_ref = refs
        else:
            p_ref, g_ref, m_ref, oi_ref, op_ref, og_ref = refs
            w_ref = None

        # Partial-sum outputs stay resident across the "arbitrary" axis.
        @pl.when(pl.program_id(1) == 0)
        def _():
            oi_ref[...] = jnp.zeros_like(oi_ref)
            op_ref[...] = jnp.zeros_like(op_ref)
            og_ref[...] = jnp.zeros_like(og_ref)

        # Stream native dtype from HBM; cast to f32 on the VPU (hidden under DMA).
        p = p_ref[...].astype(jnp.float32)
        g = g_ref[...].astype(jnp.float32)
        m = m_ref[...].astype(jnp.float32)
        if has_weights:
            m = m * w_ref[...].astype(jnp.float32)   # fused weights * mask

        pm = p * m
        gm = g * m

        def psum(x):
            if reduce_to_sublanes:
                # (br,128) -> (br//8, 8, 128): leading-dim split is layout-free
                # and the axis-0 sum is full-vreg VPU adds (no XLU in the loop).
                return jnp.sum(x.reshape(br // _SUB, _SUB, _LANE), axis=0)
            return jnp.sum(x, axis=0, keepdims=True)

        oi_ref[...] += psum(pm * g)   # intersection partials
        op_ref[...] += psum(pm)       # sum(preds * mask) partials
        og_ref[...] += psum(gm)       # sum(gt * mask)    partials

    return kernel


def dice_loss_pallas(preds, gt, mask, weights=None, eps=1e-6):
    """Dice loss. preds/gt/mask (and optional weights) share an arbitrary shape.
    Returns the scalar loss (f32)."""
    assert preds.shape == gt.shape == mask.shape
    has_weights = weights is not None
    if has_weights:
        assert weights.shape == preds.shape

    inputs = [preds, gt, mask] + ([weights] if has_weights else [])
    # bool has no clean vector-memory form; promote it (rare, not the hot path).
    inputs = [x.astype(jnp.float32) if x.dtype == jnp.bool_ else x for x in inputs]

    total = 1
    for d in preds.shape:
        total *= d
    rows = -(-total // _LANE)                    # lane-dense row count (ceil)

    # ---- row-block size from the VMEM budget --------------------------------
    itemsize_sum = sum(x.dtype.itemsize for x in inputs)
    vmem_cap = _vmem_capacity_bytes()
    # Double-buffered input streams get ~1/3 of physical VMEM (<= 40 MiB):
    # ~40 MiB on v5e/v6e (128 MiB VMEM), ~21 MiB on v7x (64 MiB VMEM).
    stream_budget = min(vmem_cap // 3, 40 << 20)
    br_cap = stream_budget // (2 * _LANE * itemsize_sum)
    br_cap = max(_SUB, min(8192, (br_cap // _SUB) * _SUB))

    if rows <= br_cap:
        br = rows                                # single step; block == full array
    else:
        br = _largest_row_divisor(rows, br_cap)
        if br is None:
            # TODO(synk): pathological row count (no multiple-of-8 divisor <= cap);
            # pad once instead of masking a partial last block in-kernel.
            br = br_cap
            rows = _round_up(rows, br)
    nsteps = rows // br

    # ---- split the reduction across TensorCores (v7x); no-op on 1-core chips -
    ncore_hw = int(getattr(jax.devices()[0], "num_cores", 2) or 2)
    ncore = 2 if (ncore_hw >= 2 and nsteps % 2 == 0) else 1
    steps_per_core = nsteps // ncore

    acc_rows = _SUB if br % _SUB == 0 else 1

    def pack(x):
        flat = x.reshape(-1)                     # free (no copy, no dtype change)
        padded = rows * _LANE
        if padded != total:
            # TODO(synk): ragged tail — this pad copies the operand once; handle
            # the tail in-kernel to avoid it.  Zero padding contributes 0 to all
            # three sums, so semantics are unchanged.
            flat = jnp.pad(flat, (0, padded - total))
        return flat.reshape(rows, _LANE)

    operands = [pack(x) for x in inputs]

    in_spec = pl.BlockSpec((br, _LANE), lambda c, i: (c * steps_per_core + i, 0))
    out_spec = pl.BlockSpec((acc_rows, _LANE), lambda c, i: (c, 0))
    out_sds = jax.ShapeDtypeStruct((ncore * acc_rows, _LANE), jnp.float32)

    block_in_bytes = br * _LANE * itemsize_sum
    block_out_bytes = 3 * acc_rows * _LANE * 4
    vmem_limit = int(min(vmem_cap,
                         max(2 * (block_in_bytes + block_out_bytes) + (4 << 20),
                             32 << 20)))

    out_i, out_p, out_g = pl.pallas_call(
        _make_dice_kernel(has_weights, acc_rows == _SUB, br),
        out_shape=(out_sds, out_sds, out_sds),
        grid_spec=pltpu.PrefetchScalarGridSpec(
            num_scalar_prefetch=0,
            grid=(ncore, steps_per_core),
            in_specs=[in_spec] * len(operands),
            out_specs=[out_spec] * 3,
        ),
        compiler_params=pltpu.CompilerParams(
            dimension_semantics=("parallel", "arbitrary"),
            vmem_limit_bytes=vmem_limit),
    )(*operands)

    # Tiny finalize on (ncore, 8, 128)-sized partials (also merges the per-core
    # partial sums from the v7x split).
    intersection = jnp.sum(out_i)
    union = jnp.sum(out_p) + jnp.sum(out_g) + eps
    return 1.0 - 2.0 * intersection / union


def _reference(preds, gt, mask, weights=None, eps=1e-6):
    if weights is not None:
        mask = weights * mask
    intersection = jnp.sum(preds * gt * mask)
    union = jnp.sum(preds * mask) + jnp.sum(gt * mask) + eps
    return 1.0 - 2.0 * intersection / union


if __name__ == "__main__":
    key = jax.random.PRNGKey(0)
    k0, k1, k2, k3 = jax.random.split(key, 4)
    shape = (2, 4, 16, 16)

    preds = jax.nn.sigmoid(jax.random.normal(k0, shape, jnp.float32))
    gt = (jax.random.uniform(k1, shape) > 0.5).astype(jnp.float32)
    mask = (jax.random.uniform(k2, shape) > 0.3).astype(jnp.float32)
    weights = jax.random.uniform(k3, shape, jnp.float32) + 0.5

    # weights=None path
    loss = jax.block_until_ready(dice_loss_pallas(preds, gt, mask))
    ref = _reference(preds, gt, mask, None)
    assert jnp.allclose(loss, ref, atol=1e-5, rtol=1e-5), (loss, ref)
    assert float(loss) <= 1.0 + 1e-6  # mirrors the torch `assert loss <= 1`

    # weights path (mask = weights * mask fused in-kernel)
    loss_w = jax.block_until_ready(dice_loss_pallas(preds, gt, mask, weights=weights))
    ref_w = _reference(preds, gt, mask, weights)
    assert jnp.allclose(loss_w, ref_w, atol=1e-5, rtol=1e-5), (loss_w, ref_w)

    # native-dtype streaming path (bf16 preds streamed as-is, cast in-kernel)
    preds_bf16 = preds.astype(jnp.bfloat16)
    loss_b = jax.block_until_ready(dice_loss_pallas(preds_bf16, gt, mask))
    ref_b = _reference(preds_bf16.astype(jnp.float32), gt, mask, None)
    assert jnp.allclose(loss_b, ref_b, atol=1e-4, rtol=1e-4), (loss_b, ref_b)

    print("KERNEL_OK")
</pallas_src>

<mosaic_0001>
module attributes {stable_mosaic.version = 11 : i64} {
  func.func @kernel(%arg0: i32, %arg1: i32, %arg2: memref<16x128xf32, #tpu.memory_space<vmem>>, %arg3: memref<16x128xf32, #tpu.memory_space<vmem>>, %arg4: memref<16x128xf32, #tpu.memory_space<vmem>>, %arg5: memref<8x128xf32, #tpu.memory_space<vmem>>, %arg6: memref<8x128xf32, #tpu.memory_space<vmem>>, %arg7: memref<8x128xf32, #tpu.memory_space<vmem>>) attributes {dimension_semantics = [#tpu.dimension_semantics<parallel>, #tpu.dimension_semantics<arbitrary>], iteration_bounds = array<i64: 1, 1>, scalar_prefetch = 0 : i64, scratch_operands = 0 : i64, tpu.core_type = #tpu.core_type<tc>, window_params = [{transform_indices = @transform_0, window_bounds = array<i64: 16, 128>}, {transform_indices = @transform_1, window_bounds = array<i64: 16, 128>}, {transform_indices = @transform_2, window_bounds = array<i64: 16, 128>}, {transform_indices = @transform_3, window_bounds = array<i64: 8, 128>}, {transform_indices = @transform_4, window_bounds = array<i64: 8, 128>}, {transform_indices = @transform_5, window_bounds = array<i64: 8, 128>}]} {
    %c0_i32 = arith.constant 0 : i32
    %0 = arith.cmpi eq, %arg1, %c0_i32 : i32
    %1 = arith.extui %0 : i1 to i32
    %c0_i32_0 = arith.constant 0 : i32
    %2 = arith.cmpi ne, %1, %c0_i32_0 : i32
    scf.if %2 {
      %cst_20 = arith.constant 0.000000e+00 : f32
      %24 = vector.broadcast %cst_20 : f32 to vector<8x128xf32>
      %c0_21 = arith.constant 0 : index
      %c0_22 = arith.constant 0 : index
      %25 = vector.load %arg5[%c0_21, %c0_22] : memref<8x128xf32, #tpu.memory_space<vmem>>, vector<8x128xf32>
      tpu.vector_store %arg5[%c0_21, %c0_22], %24 {strides = array<i32>} : memref<8x128xf32, #tpu.memory_space<vmem>>, vector<8x128xf32>,
      %cst_23 = arith.constant 0.000000e+00 : f32
      %26 = vector.broadcast %cst_23 : f32 to vector<8x128xf32>
      %c0_24 = arith.constant 0 : index
      %c0_25 = arith.constant 0 : index
      %27 = vector.load %arg6[%c0_24, %c0_25] : memref<8x128xf32, #tpu.memory_space<vmem>>, vector<8x128xf32>
      tpu.vector_store %arg6[%c0_24, %c0_25], %26 {strides = array<i32>} : memref<8x128xf32, #tpu.memory_space<vmem>>, vector<8x128xf32>,
      %cst_26 = arith.constant 0.000000e+00 : f32
      %28 = vector.broadcast %cst_26 : f32 to vector<8x128xf32>
      %c0_27 = arith.constant 0 : index
      %c0_28 = arith.constant 0 : index
      %29 = vector.load %arg7[%c0_27, %c0_28] : memref<8x128xf32, #tpu.memory_space<vmem>>, vector<8x128xf32>
      tpu.vector_store %arg7[%c0_27, %c0_28], %28 {strides = array<i32>} : memref<8x128xf32, #tpu.memory_space<vmem>>, vector<8x128xf32>,
    } else {
    }
    %c0 = arith.constant 0 : index
    %c0_1 = arith.constant 0 : index
    %3 = vector.load %arg2[%c0, %c0_1] : memref<16x128xf32, #tpu.memory_space<vmem>>, vector<16x128xf32>
    %c0_2 = arith.constant 0 : index
    %c0_3 = arith.constant 0 : index
    %4 = vector.load %arg3[%c0_2, %c0_3] : memref<16x128xf32, #tpu.memory_space<vmem>>, vector<16x128xf32>
    %c0_4 = arith.constant 0 : index
    %c0_5 = arith.constant 0 : index
    %5 = vector.load %arg4[%c0_4, %c0_5] : memref<16x128xf32, #tpu.memory_space<vmem>>, vector<16x128xf32>
    %6 = arith.mulf %3, %5 : vector<16x128xf32>
    %7 = arith.mulf %4, %5 : vector<16x128xf32>
    %c0_6 = arith.constant 0 : index
    %c0_7 = arith.constant 0 : index
    %8 = vector.load %arg5[%c0_6, %c0_7] : memref<8x128xf32, #tpu.memory_space<vmem>>, vector<8x128xf32>
    %9 = arith.mulf %6, %4 : vector<16x128xf32>
    %10 = vector.shape_cast %9 : vector<16x128xf32> to vector<2x8x128xf32>
    %cst = arith.constant dense<0.000000e+00> : vector<8x128xf32>
    %11 = vector.multi_reduction <add>, %10, %cst [0] : vector<2x8x128xf32> to vector<8x128xf32>
    %12 = arith.addf %8, %11 : vector<8x128xf32>
    %c0_8 = arith.constant 0 : index
    %c0_9 = arith.constant 0 : index
    %13 = vector.load %arg5[%c0_8, %c0_9] : memref<8x128xf32, #tpu.memory_space<vmem>>, vector<8x128xf32>
    tpu.vector_store %arg5[%c0_8, %c0_9], %12 {strides = array<i32>} : memref<8x128xf32, #tpu.memory_space<vmem>>, vector<8x128xf32>,
    %c0_10 = arith.constant 0 : index
    %c0_11 = arith.constant 0 : index
    %14 = vector.load %arg6[%c0_10, %c0_11] : memref<8x128xf32, #tpu.memory_space<vmem>>, vector<8x128xf32>
    %15 = vector.shape_cast %6 : vector<16x128xf32> to vector<2x8x128xf32>
    %cst_12 = arith.constant dense<0.000000e+00> : vector<8x128xf32>
    %16 = vector.multi_reduction <add>, %15, %cst_12 [0] : vector<2x8x128xf32> to vector<8x128xf32>
    %17 = arith.addf %14, %16 : vector<8x128xf32>
    %c0_13 = arith.constant 0 : index
    %c0_14 = arith.constant 0 : index
    %18 = vector.load %arg6[%c0_13, %c0_14] : memref<8x128xf32, #tpu.memory_space<vmem>>, vector<8x128xf32>
    tpu.vector_store %arg6[%c0_13, %c0_14], %17 {strides = array<i32>} : memref<8x128xf32, #tpu.memory_space<vmem>>, vector<8x128xf32>,
    %c0_15 = arith.constant 0 : index
    %c0_16 = arith.constant 0 : index
    %19 = vector.load %arg7[%c0_15, %c0_16] : memref<8x128xf32, #tpu.memory_space<vmem>>, vector<8x128xf32>
    %20 = vector.shape_cast %7 : vector<16x128xf32> to vector<2x8x128xf32>
    %cst_17 = arith.constant dense<0.000000e+00> : vector<8x128xf32>
    %21 = vector.multi_reduction <add>, %20, %cst_17 [0] : vector<2x8x128xf32> to vector<8x128xf32>
    %22 = arith.addf %19, %21 : vector<8x128xf32>
    %c0_18 = arith.constant 0 : index
    %c0_19 = arith.constant 0 : index
    %23 = vector.load %arg7[%c0_18, %c0_19] : memref<8x128xf32, #tpu.memory_space<vmem>>, vector<8x128xf32>
    tpu.vector_store %arg7[%c0_18, %c0_19], %22 {strides = array<i32>} : memref<8x128xf32, #tpu.memory_space<vmem>>, vector<8x128xf32>,
    return
  }
  func.func @transform_0(%arg0: i32, %arg1: i32) -> (i32, i32) {
    %c1_i32 = arith.constant 1 : i32
    %0 = arith.muli %arg0, %c1_i32 : i32
    %1 = arith.addi %0, %arg1 : i32
    %c0_i32 = arith.constant 0 : i32
    %c0_i32_0 = arith.constant 0 : i32
    return %1, %c0_i32 : i32, i32
  }
  func.func @transform_1(%arg0: i32, %arg1: i32) -> (i32, i32) {
    %c1_i32 = arith.constant 1 : i32
    %0 = arith.muli %arg0, %c1_i32 : i32
    %1 = arith.addi %0, %arg1 : i32
    %c0_i32 = arith.constant 0 : i32
    %c0_i32_0 = arith.constant 0 : i32
    return %1, %c0_i32 : i32, i32
  }
  func.func @transform_2(%arg0: i32, %arg1: i32) -> (i32, i32) {
    %c1_i32 = arith.constant 1 : i32
    %0 = arith.muli %arg0, %c1_i32 : i32
    %1 = arith.addi %0, %arg1 : i32
    %c0_i32 = arith.constant 0 : i32
    %c0_i32_0 = arith.constant 0 : i32
    return %1, %c0_i32 : i32, i32
  }
  func.func @transform_3(%arg0: i32, %arg1: i32) -> (i32, i32) {
    %c0_i32 = arith.constant 0 : i32
    %c0_i32_0 = arith.constant 0 : i32
    return %arg0, %c0_i32 : i32, i32
  }
  func.func @transform_4(%arg0: i32, %arg1: i32) -> (i32, i32) {
    %c0_i32 = arith.constant 0 : i32
    %c0_i32_0 = arith.constant 0 : i32
    return %arg0, %c0_i32 : i32, i32
  }
  func.func @transform_5(%arg0: i32, %arg1: i32) -> (i32, i32) {
    %c0_i32 = arith.constant 0 : i32
    %c0_i32_0 = arith.constant 0 : i32
    return %arg0, %c0_i32 : i32, i32
  }
}

</mosaic_0001>

<bundles_post_ra>
// kernel: tpu_custom_call.1
= control target key start
LH: loop header
LB: loop body
LE: loop exit
PB: predicated region body
PF: predicated region fallthrough
CT: control target
= control target key end

     0   :  { %11 = vsyncpa [#allocation3], 0  ;;  %s345_s0 = inlined_call_operand.hbm [shape: f32[16,128], index: 0, kind: input, shape index: {}]   ;;  %s346_s1 = inlined_call_operand.hbm [shape: f32[16,128], index: 1, kind: input, shape index: {}]   ;;  %s347_s2 = inlined_call_operand.hbm [shape: f32[16,128], index: 2, kind: input, shape index: {}]   ;;  %s348_s3 = inlined_call_operand.hbm [shape: f32[8,128], index: 3, kind: output, shape index: {0}]   ;;  %s349_s4 = inlined_call_operand.hbm [shape: f32[8,128], index: 4, kind: output, shape index: {1}]   ;;  %s350_s5 = inlined_call_operand.hbm [shape: f32[8,128], index: 5, kind: output, shape index: {2}]  }
   0x1   :  { %12 = vsyncpa [#allocation6], 0 }
   0x2   :  { %13 = vsyncpa [#allocation4], 0 }
   0x3   :  { %14 = vsyncpa [#allocation10], 0  ;;  %s289_s18 = smov [#allocation5]   ;;  %s290_s20 = smov [#allocation2]  }
   0x4   :  { %s40_s19 = sshll.u32 %s289_s18, 4  ;;  %s24_s21 = sshll.u32 %s290_s20, 4  ;;  %s41_s19 = int_to_ptr.vmem [resolvable:$true] %s40_s19  ;;  %s25_s21 = int_to_ptr.vmem [resolvable:$true] %s24_s21 }
   0x5   :  { %s169_s22 = scalar_lea.vmem %s41_s19, 256  ;;  %p174_p1 = scmp.lt.s32.totalorder %s41_s19, %s41_s19 }
   0x6   :  { %p170_p0 = scmp.ne.s32.totalorder %s41_s19, %s169_s22  ;;  %p175_p2 = scmp.lt.s32.totalorder %s169_s22, %s169_s22 }
   0x8   :  { %p176_p3 = por %p175_p2, %p174_p1 }
   0xa   :  { %p177_p4 = pnand %p176_p3, %p170_p0 }
   0xc   :  { %180 = shalt.err (!%p177_p4)
}
   0xd   :  { %s291_s23 = smov 128   ;;  %s292_s24 = smov 8  }
   0xe   :  { %46 = dma.hbm_to_vmem [thread:$0]  %s346_s1, 256, %s41_s19, [#allocation6], %s291_s23, %s291_s23, %s292_s24  }
   0xf   :  { %s189_s27 = scalar_lea.vmem %s25_s21, 256  ;;  %p194_p6 = scmp.lt.s32.totalorder %s25_s21, %s25_s21 }
  0x10   :  { %p190_p5 = scmp.ne.s32.totalorder %s25_s21, %s189_s27  ;;  %p195_p7 = scmp.lt.s32.totalorder %s189_s27, %s189_s27 }
  0x12   :  { %p196_p8 = por %p195_p7, %p194_p6 }
  0x14   :  { %p197_p9 = pnand %p196_p8, %p190_p5 }
  0x16   :  { %200 = shalt.err (!%p197_p9)
}
  0x17   :  { %30 = dma.hbm_to_vmem [thread:$0]  %s345_s0, 256, %s25_s21, [#allocation3], %s291_s23, %s291_s23, %s292_s24  }
  0x18   :  { %s293_s30 = smov [#allocation7]  }
  0x19   :  { %s56_s6 = sshll.u32 %s293_s30, 4  ;;  %s57_s6 = int_to_ptr.vmem [resolvable:$true] %s56_s6 }
  0x1a   :  { %s209_s7 = scalar_lea.vmem %s57_s6, 256  ;;  %p214_p11 = scmp.lt.s32.totalorder %s57_s6, %s57_s6 }
  0x1b   :  { %p210_p10 = scmp.ne.s32.totalorder %s57_s6, %s209_s7  ;;  %p215_p12 = scmp.lt.s32.totalorder %s209_s7, %s209_s7 }
  0x1d   :  { %p216_p13 = por %p215_p12, %p214_p11 }
  0x1f   :  { %p217_p0 = pnand %p216_p13, %p210_p10 }
  0x21   :  { %220 = shalt.err (!%p217_p0)
}
  0x22   :  { %62 = dma.hbm_to_vmem [thread:$0]  %s347_s2, 256, %s57_s6, [#allocation6], %s291_s23, %s291_s23, %s292_s24  }
  0x23   :  { %281 = dma.done.wait [#allocation3], 256  }
  0x24   :  { %282 = vsyncadd [#allocation3], 4294967040 }
  0x25   :  { %283 = dma.done.wait [#allocation6], 512  }
  0x26   :  { %284 = vsyncadd [#allocation6], 4294966784  ;;  %v85_v0 = vld [vmem:[#allocation2] sm:$0xff]  ;;  %v86_v1 = vld [vmem:[#allocation2 + $0x8] sm:$0xff]  ;;  %s294_s0 = smov [#allocation9]   ;;  %s295_s2 = smov [#allocation11]  }
  0x27   :  { %v89_v2 = vld [vmem:[#allocation7] sm:$0xff]  ;;  %v90_v3 = vld [vmem:[#allocation7 + $0x8] sm:$0xff]  ;;  %v87_v5 = vld [vmem:[#allocation5] sm:$0xff]  ;;  %s125_s9 = sshll.u32 %s294_s0, 4  ;;  %s135_s10 = sshll.u32 %s295_s2, 4  ;;  %s126_s9 = int_to_ptr.vmem [resolvable:$true] %s125_s9  ;;  %s136_s10 = int_to_ptr.vmem [resolvable:$true] %s135_s10 }
  0x28   :  { %v91_v4 = vmul.f32 %v89_v2, %v85_v0  ;;  %v88_v6 = vld [vmem:[#allocation5 + $0x8] sm:$0xff]  ;;  %v92_v7 = vmul.f32 %v90_v3, %v86_v1  ;;  %v93_v8 = vmul.f32 %v89_v2, %v87_v5  ;;  %s296_s11 = smov [#allocation8]   ;;  %s221_s13 = scalar_lea.vmem %s126_s9, 128 }
  0x29   :  { %v94_v9 = vmul.f32 %v90_v3, %v88_v6  ;;  %s115_s12 = sshll.u32 %s296_s11, 4  ;;  %p222_p1 = scmp.ne.s32.totalorder %s126_s9, %s221_s13  ;;  %s116_s12 = int_to_ptr.vmem [resolvable:$true] %s115_s12 }
  0x2a   :  { %v96_v10 = vmul.f32 %v91_v4, %v87_v5  ;;  %v102_v11 = vadd.f32 %v92_v7, %v91_v4  ;;  %v97_v12 = vmul.f32 %v92_v7, %v88_v6  ;;  %p226_p2 = scmp.lt.s32.totalorder %s126_s9, %s126_s9  ;;  %p227_p3 = scmp.lt.s32.totalorder %s221_s13, %s221_s13 }
  0x2b   :  { %v106_v13 = vadd.f32 %v94_v9, %v93_v8 }
  0x2c   :  { %v98_v14 = vadd.f32 %v97_v12, %v96_v10  ;;  %104 = vst [vmem:[#allocation9] sm:$0xff] %v102_v11  ;;  %p228_p4 = por %p227_p3, %p226_p2 }
  0x2d   :  { %108 = vst [vmem:[#allocation11] sm:$0xff] %v106_v13 }
  0x2e   :  { %p229_p5 = pnand %p228_p4, %p222_p1 }
  0x30   :  { %232 = shalt.err (!%p229_p5)
}
  0x31   :  { %128 = dma.vmem_to_hbm [thread:$0]  %s126_s9, 128, %s349_s4, [#allocation10]   ;;  %100 = vst [vmem:[#allocation8] sm:$0xff] %v98_v14 }
  0x32   :  { %s241_s16 = scalar_lea.vmem %s136_s10, 128  ;;  %p246_p7 = scmp.lt.s32.totalorder %s136_s10, %s136_s10 }
  0x33   :  { %p242_p6 = scmp.ne.s32.totalorder %s136_s10, %s241_s16  ;;  %p247_p8 = scmp.lt.s32.totalorder %s241_s16, %s241_s16 }
  0x35   :  { %p248_p9 = por %p247_p8, %p246_p7 }
  0x37   :  { %p249_p10 = pnand %p248_p9, %p242_p6 }
  0x39   :  { %252 = shalt.err (!%p249_p10)
}
  0x3a   :  { %138 = dma.vmem_to_hbm [thread:$0]  %s136_s10, 128, %s350_s5, [#allocation10]  }
  0x3b   :  { %s261_s19 = scalar_lea.vmem %s116_s12, 128  ;;  %p266_p12 = scmp.lt.s32.totalorder %s116_s12, %s116_s12 }
  0x3c   :  { %p262_p11 = scmp.ne.s32.totalorder %s116_s12, %s261_s19  ;;  %p267_p13 = scmp.lt.s32.totalorder %s261_s19, %s261_s19 }
  0x3e   :  { %p268_p0 = por %p267_p13, %p266_p12 }
  0x40   :  { %p269_p1 = pnand %p268_p0, %p262_p11 }
  0x42   :  { %272 = shalt.err (!%p269_p1)
}
  0x43   :  { %118 = dma.vmem_to_hbm [thread:$0]  %s116_s12, 128, %s348_s3, [#allocation4]  }
  0x44   :  { %285 = dma.done.wait [#allocation4], 128  }
  0x45   :  { %286 = vsyncadd [#allocation4], 4294967168 }
  0x46   :  { %287 = dma.done.wait [#allocation10], 256  }
  0x47   :  { %288 = vsyncadd [#allocation10], 4294967040 }
  0x48   :  { %148 = vsyncpa [#allocation3], 1 }
  0x49   :  { %149 = vsyncpa [#allocation6], 1 }
  0x4a   :  { %150 = vsyncpa [#allocation4], 1 }
  0x4b   :  { %151 = vsyncpa [#allocation10], 1 }

</bundles_post_ra>
